<compile_context>
chip_gen: v6e
topology: v6e:2x2x1
jax: 0.10.0
libtpu: 0.0.40
codegen_flags: <defaults>
</compile_context>

<pallas_src>
import functools

import jax
import jax.numpy as jnp
import numpy as np
from jax.experimental import pallas as pl
from jax.experimental.pallas import tpu as pltpu


# ----------------------------- Pallas kernels ------------------------------

def _conv_taps(x_ref, w_ref, owp1, lo):
    """16-tap conv accumulation.

    x_ref: (1, 4, Cin_p, Lp_pad) bf16 phase-flattened padded input (whole image).
    w_ref: (16, TCout, Cin_p)    bf16 per-tap weights.
    Returns (TCout, lo) f32 where lo = OH*(OW+1) (padded-flat spatial, 1 junk lane / row).
    """
    acc = None
    for kh in range(4):
        for kw in range(4):
            t = kh * 4 + kw
            p = (kh % 2) * 2 + (kw % 2)                 # which parity phase holds this tap
            shift = (kh // 2) * owp1 + (kw // 2)        # pure lane shift in the flat layout
            xt = x_ref[0, p, :, pl.ds(shift, lo)]       # (Cin_p, lo) contiguous slice
            part = jnp.dot(w_ref[t], xt, preferred_element_type=jnp.float32)
            acc = part if acc is None else acc + part
    return acc


def conv_kernel(x_ref, w_ref, conv_ref, *, owp1):
    """No-BN path pass 1: conv only (bias folded into pass 2), bf16 intermediate."""
    lo = conv_ref.shape[2]
    conv_ref[0] = _conv_taps(x_ref, w_ref, owp1, lo).astype(conv_ref.dtype)


def conv_stats_kernel(mask_ref, x_ref, w_ref, conv_ref, psum_ref, psq_ref, *, owp1):
    """BN path pass 1: conv (f32 acc) -> bf16 slab + per-channel sum / sum-of-squares.

    Stats are taken from the f32 accumulator (before the bf16 cast) and computed as MXU
    products against a (Lo, 1) mask column that zeroes the junk lanes.
    """
    lo = conv_ref.shape[2]
    acc = _conv_taps(x_ref, w_ref, owp1, lo)            # (TCout, Lo) f32
    conv_ref[0] = acc.astype(conv_ref.dtype)
    m = mask_ref[...]                                   # (Lo, 1) f32, 0 on junk lanes
    psum_ref[0] = jnp.dot(acc, m, preferred_element_type=jnp.float32)        # (TCout, 1)
    psq_ref[0] = jnp.dot(acc * acc, m, preferred_element_type=jnp.float32)   # (TCout, 1)


def affine_leaky_strip_kernel(x_ref, scale_ref, shift_ref, o_ref):
    """Pass 2: y = conv*scale + shift, LeakyReLU(0.2), drop the junk lane -> NCHW f32.

    No-BN path: scale = 1, shift = bias.  BN path: scale = gamma/sqrt(var+eps),
    shift = beta - mean*scale (the conv bias cancels inside BatchNorm).
    """
    ow = o_ref.shape[3]
    y = x_ref[0, :, :, pl.ds(0, ow)].astype(jnp.float32)        # (TCout, OH, OW)
    y = y * scale_ref[...] + shift_ref[...]                     # (TCout, OH, 1) lane-broadcast
    o_ref[0] = jnp.where(y >= 0.0, y, 0.2 * y)


# ------------------------------ JAX wrapper ---------------------------------

def c_k_forward(x, weight, bias, gamma, beta, *, n_inn, stride=2, eps=1e-5,
                compute_dtype=jnp.bfloat16):
    """Forward of C_k. x: (N, Cin, H, W) f32 -> (N, Cout, H//2, W//2) f32.

    Matches a freshly-constructed PyTorch module in training mode: BatchNorm2d
    (when n_inn not in {3, 6}) uses biased batch statistics over (N, H, W).
    """
    if stride != 2:
        raise NotImplementedError("C_k Pallas kernel implements k=4, stride=2, pad=1")
    N, Cin, H, W = x.shape
    Cout = weight.shape[0]
    assert H % 2 == 0 and W % 2 == 0, "even spatial dims expected (PatchGAN)"
    OH, OW = H // 2, W // 2
    OWp1 = OW + 1
    Lo = OH * OWp1                                  # padded-flat output width (1 junk lane/row)
    Lp = (OH + 1) * OWp1                            # padded-flat input width per phase
    Lp_pad = ((Lo + OW + 2 + 127) // 128) * 128     # >= Lp+1 so every tap slice is in-bounds
    Cin_p = -(-Cin // 8) * 8                        # pad Cin to a sublane multiple (zeros)

    # --- XLA-side prep (one fusion): pad -> 2x2 phase split -> flatten -> pad -> bf16 ---
    # xflat[n, ph*2+pw, c, i*(OW+1)+j] = x_pad[n, c, 2i+ph, 2j+pw]
    xp = jnp.pad(x, ((0, 0), (0, 0), (1, 1), (1, 1)))
    xph = xp.reshape(N, Cin, OH + 1, 2, OWp1, 2).transpose(0, 3, 5, 1, 2, 4)
    xflat = xph.reshape(N, 4, Cin, Lp)
    xflat = jnp.pad(xflat, ((0, 0), (0, 0), (0, Cin_p - Cin), (0, Lp_pad - Lp)))
    xflat = xflat.astype(compute_dtype)

    # Per-tap weights: w_taps[kh*4+kw] = weight[:, :, kh, kw]  (zero-padded along Cin).
    w_taps = weight.transpose(2, 3, 0, 1).reshape(16, Cout, Cin)
    w_taps = jnp.pad(w_taps, ((0, 0), (0, 0), (0, Cin_p - Cin))).astype(compute_dtype)

    # Split Cout in two when possible so a single-image call still feeds both v7x cores.
    CT = 2 if (Cout % 16 == 0) else 1
    TCout = Cout // CT
    grid = (CT, N)                                  # ct OUTER -> weights fetched once per half
    cparams = pltpu.CompilerParams(
        dimension_semantics=("parallel", "parallel"),
        vmem_limit_bytes=48 * 1024 * 1024)          # within the v7x 64 MiB envelope

    x_spec = pl.BlockSpec((1, 4, Cin_p, Lp_pad), lambda ct, n: (n, 0, 0, 0))
    w_spec = pl.BlockSpec((16, TCout, Cin_p), lambda ct, n: (0, ct, 0))
    conv_spec = pl.BlockSpec((1, TCout, Lo), lambda ct, n: (n, ct, 0))

    use_bn = n_inn not in (3, 6)

    if use_bn:
        mask_np = np.ones((OH, OWp1), np.float32)
        mask_np[:, OW] = 0.0                        # junk lanes excluded from the statistics
        maskcol = jnp.asarray(mask_np.reshape(Lo, 1))
        stat_spec = pl.BlockSpec((1, TCout, 1), lambda ct, n: (n, ct, 0))
        conv_p, psum, psq = pl.pallas_call(
            functools.partial(conv_stats_kernel, owp1=OWp1),
            grid=grid,
            in_specs=[pl.BlockSpec((Lo, 1), lambda ct, n: (0, 0)), x_spec, w_spec],
            out_specs=[conv_spec, stat_spec, stat_spec],
            out_shape=[jax.ShapeDtypeStruct((N, Cout, Lo), compute_dtype),
                       jax.ShapeDtypeStruct((N, Cout, 1), jnp.float32),
                       jax.ShapeDtypeStruct((N, Cout, 1), jnp.float32)],
            compiler_params=cparams,
        )(maskcol, xflat, w_taps)

        cnt = float(N * OH * OW)
        mean = jnp.sum(psum, axis=(0, 2)) / cnt
        ex2 = jnp.sum(psq, axis=(0, 2)) / cnt
        var = jnp.maximum(ex2 - mean * mean, 0.0)   # biased (training-mode) variance, clamped
        inv_std = jax.lax.rsqrt(var + eps)
        scale = gamma.astype(jnp.float32) * inv_std
        shift = beta.astype(jnp.float32) - mean * scale    # conv bias cancels inside BN
    else:
        conv_p = pl.pallas_call(
            functools.partial(conv_kernel, owp1=OWp1),
            grid=grid,
            in_specs=[x_spec, w_spec],
            out_specs=conv_spec,
            out_shape=jax.ShapeDtypeStruct((N, Cout, Lo), compute_dtype),
            compiler_params=cparams,
        )(xflat, w_taps)
        scale = jnp.ones((Cout,), jnp.float32)
        shift = bias.astype(jnp.float32)

    # --- pass 2: folded affine + LeakyReLU + junk-lane strip, directly into NCHW f32 ---
    conv4d = conv_p.reshape(N, Cout, OH, OWp1)      # free metadata reshape (row-major split)
    scale_b = jnp.broadcast_to(scale[:, None, None], (Cout, OH, 1))
    shift_b = jnp.broadcast_to(shift[:, None, None], (Cout, OH, 1))
    out = pl.pallas_call(
        affine_leaky_strip_kernel,
        grid=grid,
        in_specs=[pl.BlockSpec((1, TCout, OH, OWp1), lambda ct, n: (n, ct, 0, 0)),
                  pl.BlockSpec((TCout, OH, 1), lambda ct, n: (ct, 0, 0)),
                  pl.BlockSpec((TCout, OH, 1), lambda ct, n: (ct, 0, 0))],
        out_specs=pl.BlockSpec((1, TCout, OH, OW), lambda ct, n: (n, ct, 0, 0)),
        out_shape=jax.ShapeDtypeStruct((N, Cout, OH, OW), jnp.float32),
        compiler_params=cparams,
    )(conv4d, scale_b, shift_b)
    return out


# ----------------------------- reference (JAX) ------------------------------

def c_k_reference(x, weight, bias, gamma, beta, *, n_inn, stride=2, eps=1e-5):
    y = jax.lax.conv_general_dilated(
        x, weight, window_strides=(stride, stride), padding=((1, 1), (1, 1)),
        dimension_numbers=("NCHW", "OIHW", "NCHW"))
    y = y + bias[None, :, None, None]
    if n_inn not in (3, 6):
        mean = jnp.mean(y, axis=(0, 2, 3), keepdims=True)
        var = jnp.mean(jnp.square(y - mean), axis=(0, 2, 3), keepdims=True)
        y = (y - mean) / jnp.sqrt(var + eps)
        y = y * gamma[None, :, None, None] + beta[None, :, None, None]
    return jnp.where(y >= 0.0, y, 0.2 * y)


# --------------------------------- main --------------------------------------

if __name__ == "__main__":
    key = jax.random.PRNGKey(0)
    kx, kw, kb, kx2, kw2, kb2 = jax.random.split(key, 6)

    N, H, W = 2, 16, 16
    n_filters = 8
    gamma = jnp.ones((n_filters,), jnp.float32)   # BatchNorm2d default weight
    beta = jnp.zeros((n_filters,), jnp.float32)   # BatchNorm2d default bias

    # --- Case 1: C_k(n_inn=4, n_filters=8)  ->  Conv + BatchNorm + LeakyReLU ---
    n_inn = 4
    x = jax.random.normal(kx, (N, n_inn, H, W), jnp.float32)
    bound = 1.0 / np.sqrt(n_inn * 16)
    weight = jax.random.uniform(kw, (n_filters, n_inn, 4, 4), jnp.float32, -bound, bound)
    bias = jax.random.uniform(kb, (n_filters,), jnp.float32, -bound, bound)

    fwd = jax.jit(functools.partial(c_k_forward, n_inn=n_inn, stride=2))
    out = jax.block_until_ready(fwd(x, weight, bias, gamma, beta))
    ref = jax.block_until_ready(
        c_k_reference(x, weight, bias, gamma, beta, n_inn=n_inn, stride=2))
    assert out.shape == (N, n_filters, H // 2, W // 2), out.shape
    np.testing.assert_allclose(np.asarray(out), np.asarray(ref), rtol=2e-2, atol=2e-2)

    # --- Case 2: C_k(n_inn=3, n_filters=8)  ->  Conv + LeakyReLU (no BatchNorm) ---
    n_inn2 = 3
    x2 = jax.random.normal(kx2, (N, n_inn2, H, W), jnp.float32)
    bound2 = 1.0 / np.sqrt(n_inn2 * 16)
    weight2 = jax.random.uniform(kw2, (n_filters, n_inn2, 4, 4), jnp.float32, -bound2, bound2)
    bias2 = jax.random.uniform(kb2, (n_filters,), jnp.float32, -bound2, bound2)

    fwd2 = jax.jit(functools.partial(c_k_forward, n_inn=n_inn2, stride=2))
    out2 = jax.block_until_ready(fwd2(x2, weight2, bias2, gamma, beta))
    ref2 = jax.block_until_ready(
        c_k_reference(x2, weight2, bias2, gamma, beta, n_inn=n_inn2, stride=2))
    np.testing.assert_allclose(np.asarray(out2), np.asarray(ref2), rtol=2e-2, atol=2e-2)

    print("KERNEL_OK")
</pallas_src>

<mosaic_0001>
module attributes {stable_mosaic.version = 11 : i64} {
  func.func @conv_stats_kernel(%arg0: i32, %arg1: i32, %arg2: memref<72x1xf32, #tpu.memory_space<vmem>>, %arg3: memref<1x4x8x128xbf16, #tpu.memory_space<vmem>>, %arg4: memref<16x8x8xbf16, #tpu.memory_space<vmem>>, %arg5: memref<1x8x72xbf16, #tpu.memory_space<vmem>>, %arg6: memref<1x8x1xf32, #tpu.memory_space<vmem>>, %arg7: memref<1x8x1xf32, #tpu.memory_space<vmem>>) attributes {dimension_semantics = [#tpu.dimension_semantics<parallel>, #tpu.dimension_semantics<parallel>], iteration_bounds = array<i64: 1, 2>, scalar_prefetch = 0 : i64, scratch_operands = 0 : i64, tpu.core_type = #tpu.core_type<tc>, window_params = [{pipeline_mode = #tpu.pipeline_mode<synchronous>, transform_indices = @transform_0, window_bounds = array<i64: 72, 1>}, {transform_indices = @transform_1, window_bounds = array<i64: 1, 4, 8, 128>}, {transform_indices = @transform_2, window_bounds = array<i64: 16, 8, 8>}, {transform_indices = @transform_3, window_bounds = array<i64: 1, 8, 72>}, {transform_indices = @transform_4, window_bounds = array<i64: 1, 8, 1>}, {transform_indices = @transform_5, window_bounds = array<i64: 1, 8, 1>}]} {
    %c0 = arith.constant 0 : index
    %c0_0 = arith.constant 0 : index
    %c0_1 = arith.constant 0 : index
    %c0_2 = arith.constant 0 : index
    %0 = vector.load %arg3[%c0, %c0_0, %c0_1, %c0_2] : memref<1x4x8x128xbf16, #tpu.memory_space<vmem>>, vector<1x1x8x72xbf16>
    %1 = vector.shape_cast %0 : vector<1x1x8x72xbf16> to vector<8x72xbf16>
    %c0_3 = arith.constant 0 : index
    %c0_4 = arith.constant 0 : index
    %c0_5 = arith.constant 0 : index
    %2 = vector.load %arg4[%c0_3, %c0_4, %c0_5] : memref<16x8x8xbf16, #tpu.memory_space<vmem>>, vector<1x8x8xbf16>
    %3 = vector.shape_cast %2 : vector<1x8x8xbf16> to vector<8x8xbf16>
    %cst = arith.constant dense<0.000000e+00> : vector<8x72xf32>
    %4 = tpu.matmul %3, %1, %cst {dimension_numbers = #tpu.dot_dimension_numbers<[1], [0], [0], [1], [0, 0, 1, 1], [], []>} : vector<8x8xbf16>, vector<8x72xbf16>, vector<8x72xf32> -> vector<8x72xf32>
    %c0_6 = arith.constant 0 : index
    %c1 = arith.constant 1 : index
    %c0_7 = arith.constant 0 : index
    %c0_8 = arith.constant 0 : index
    %5 = vector.load %arg3[%c0_6, %c1, %c0_7, %c0_8] : memref<1x4x8x128xbf16, #tpu.memory_space<vmem>>, vector<1x1x8x72xbf16>
    %6 = vector.shape_cast %5 : vector<1x1x8x72xbf16> to vector<8x72xbf16>
    %c1_9 = arith.constant 1 : index
    %c0_10 = arith.constant 0 : index
    %c0_11 = arith.constant 0 : index
    %7 = vector.load %arg4[%c1_9, %c0_10, %c0_11] : memref<16x8x8xbf16, #tpu.memory_space<vmem>>, vector<1x8x8xbf16>
    %8 = vector.shape_cast %7 : vector<1x8x8xbf16> to vector<8x8xbf16>
    %cst_12 = arith.constant dense<0.000000e+00> : vector<8x72xf32>
    %9 = tpu.matmul %8, %6, %cst_12 {dimension_numbers = #tpu.dot_dimension_numbers<[1], [0], [0], [1], [0, 0, 1, 1], [], []>} : vector<8x8xbf16>, vector<8x72xbf16>, vector<8x72xf32> -> vector<8x72xf32>
    %10 = arith.addf %4, %9 : vector<8x72xf32>
    %c0_13 = arith.constant 0 : index
    %c0_14 = arith.constant 0 : index
    %c0_15 = arith.constant 0 : index
    %c1_16 = arith.constant 1 : index
    %11 = vector.load %arg3[%c0_13, %c0_14, %c0_15, %c1_16] : memref<1x4x8x128xbf16, #tpu.memory_space<vmem>>, vector<1x1x8x72xbf16>
    %12 = vector.shape_cast %11 : vector<1x1x8x72xbf16> to vector<8x72xbf16>
    %c2 = arith.constant 2 : index
    %c0_17 = arith.constant 0 : index
    %c0_18 = arith.constant 0 : index
    %13 = vector.load %arg4[%c2, %c0_17, %c0_18] : memref<16x8x8xbf16, #tpu.memory_space<vmem>>, vector<1x8x8xbf16>
    %14 = vector.shape_cast %13 : vector<1x8x8xbf16> to vector<8x8xbf16>
    %cst_19 = arith.constant dense<0.000000e+00> : vector<8x72xf32>
    %15 = tpu.matmul %14, %12, %cst_19 {dimension_numbers = #tpu.dot_dimension_numbers<[1], [0], [0], [1], [0, 0, 1, 1], [], []>} : vector<8x8xbf16>, vector<8x72xbf16>, vector<8x72xf32> -> vector<8x72xf32>
    %16 = arith.addf %10, %15 : vector<8x72xf32>
    %c0_20 = arith.constant 0 : index
    %c1_21 = arith.constant 1 : index
    %c0_22 = arith.constant 0 : index
    %c1_23 = arith.constant 1 : index
    %17 = vector.load %arg3[%c0_20, %c1_21, %c0_22, %c1_23] : memref<1x4x8x128xbf16, #tpu.memory_space<vmem>>, vector<1x1x8x72xbf16>
    %18 = vector.shape_cast %17 : vector<1x1x8x72xbf16> to vector<8x72xbf16>
    %c3 = arith.constant 3 : index
    %c0_24 = arith.constant 0 : index
    %c0_25 = arith.constant 0 : index
    %19 = vector.load %arg4[%c3, %c0_24, %c0_25] : memref<16x8x8xbf16, #tpu.memory_space<vmem>>, vector<1x8x8xbf16>
    %20 = vector.shape_cast %19 : vector<1x8x8xbf16> to vector<8x8xbf16>
    %cst_26 = arith.constant dense<0.000000e+00> : vector<8x72xf32>
    %21 = tpu.matmul %20, %18, %cst_26 {dimension_numbers = #tpu.dot_dimension_numbers<[1], [0], [0], [1], [0, 0, 1, 1], [], []>} : vector<8x8xbf16>, vector<8x72xbf16>, vector<8x72xf32> -> vector<8x72xf32>
    %22 = arith.addf %16, %21 : vector<8x72xf32>
    %c0_27 = arith.constant 0 : index
    %c2_28 = arith.constant 2 : index
    %c0_29 = arith.constant 0 : index
    %c0_30 = arith.constant 0 : index
    %23 = vector.load %arg3[%c0_27, %c2_28, %c0_29, %c0_30] : memref<1x4x8x128xbf16, #tpu.memory_space<vmem>>, vector<1x1x8x72xbf16>
    %24 = vector.shape_cast %23 : vector<1x1x8x72xbf16> to vector<8x72xbf16>
    %c4 = arith.constant 4 : index
    %c0_31 = arith.constant 0 : index
    %c0_32 = arith.constant 0 : index
    %25 = vector.load %arg4[%c4, %c0_31, %c0_32] : memref<16x8x8xbf16, #tpu.memory_space<vmem>>, vector<1x8x8xbf16>
    %26 = vector.shape_cast %25 : vector<1x8x8xbf16> to vector<8x8xbf16>
    %cst_33 = arith.constant dense<0.000000e+00> : vector<8x72xf32>
    %27 = tpu.matmul %26, %24, %cst_33 {dimension_numbers = #tpu.dot_dimension_numbers<[1], [0], [0], [1], [0, 0, 1, 1], [], []>} : vector<8x8xbf16>, vector<8x72xbf16>, vector<8x72xf32> -> vector<8x72xf32>
    %28 = arith.addf %22, %27 : vector<8x72xf32>
    %c0_34 = arith.constant 0 : index
    %c3_35 = arith.constant 3 : index
    %c0_36 = arith.constant 0 : index
    %c0_37 = arith.constant 0 : index
    %29 = vector.load %arg3[%c0_34, %c3_35, %c0_36, %c0_37] : memref<1x4x8x128xbf16, #tpu.memory_space<vmem>>, vector<1x1x8x72xbf16>
    %30 = vector.shape_cast %29 : vector<1x1x8x72xbf16> to vector<8x72xbf16>
    %c5 = arith.constant 5 : index
    %c0_38 = arith.constant 0 : index
    %c0_39 = arith.constant 0 : index
    %31 = vector.load %arg4[%c5, %c0_38, %c0_39] : memref<16x8x8xbf16, #tpu.memory_space<vmem>>, vector<1x8x8xbf16>
    %32 = vector.shape_cast %31 : vector<1x8x8xbf16> to vector<8x8xbf16>
    %cst_40 = arith.constant dense<0.000000e+00> : vector<8x72xf32>
    %33 = tpu.matmul %32, %30, %cst_40 {dimension_numbers = #tpu.dot_dimension_numbers<[1], [0], [0], [1], [0, 0, 1, 1], [], []>} : vector<8x8xbf16>, vector<8x72xbf16>, vector<8x72xf32> -> vector<8x72xf32>
    %34 = arith.addf %28, %33 : vector<8x72xf32>
    %c0_41 = arith.constant 0 : index
    %c2_42 = arith.constant 2 : index
    %c0_43 = arith.constant 0 : index
    %c1_44 = arith.constant 1 : index
    %35 = vector.load %arg3[%c0_41, %c2_42, %c0_43, %c1_44] : memref<1x4x8x128xbf16, #tpu.memory_space<vmem>>, vector<1x1x8x72xbf16>
    %36 = vector.shape_cast %35 : vector<1x1x8x72xbf16> to vector<8x72xbf16>
    %c6 = arith.constant 6 : index
    %c0_45 = arith.constant 0 : index
    %c0_46 = arith.constant 0 : index
    %37 = vector.load %arg4[%c6, %c0_45, %c0_46] : memref<16x8x8xbf16, #tpu.memory_space<vmem>>, vector<1x8x8xbf16>
    %38 = vector.shape_cast %37 : vector<1x8x8xbf16> to vector<8x8xbf16>
    %cst_47 = arith.constant dense<0.000000e+00> : vector<8x72xf32>
    %39 = tpu.matmul %38, %36, %cst_47 {dimension_numbers = #tpu.dot_dimension_numbers<[1], [0], [0], [1], [0, 0, 1, 1], [], []>} : vector<8x8xbf16>, vector<8x72xbf16>, vector<8x72xf32> -> vector<8x72xf32>
    %40 = arith.addf %34, %39 : vector<8x72xf32>
    %c0_48 = arith.constant 0 : index
    %c3_49 = arith.constant 3 : index
    %c0_50 = arith.constant 0 : index
    %c1_51 = arith.constant 1 : index
    %41 = vector.load %arg3[%c0_48, %c3_49, %c0_50, %c1_51] : memref<1x4x8x128xbf16, #tpu.memory_space<vmem>>, vector<1x1x8x72xbf16>
    %42 = vector.shape_cast %41 : vector<1x1x8x72xbf16> to vector<8x72xbf16>
    %c7 = arith.constant 7 : index
    %c0_52 = arith.constant 0 : index
    %c0_53 = arith.constant 0 : index
    %43 = vector.load %arg4[%c7, %c0_52, %c0_53] : memref<16x8x8xbf16, #tpu.memory_space<vmem>>, vector<1x8x8xbf16>
    %44 = vector.shape_cast %43 : vector<1x8x8xbf16> to vector<8x8xbf16>
    %cst_54 = arith.constant dense<0.000000e+00> : vector<8x72xf32>
    %45 = tpu.matmul %44, %42, %cst_54 {dimension_numbers = #tpu.dot_dimension_numbers<[1], [0], [0], [1], [0, 0, 1, 1], [], []>} : vector<8x8xbf16>, vector<8x72xbf16>, vector<8x72xf32> -> vector<8x72xf32>
    %46 = arith.addf %40, %45 : vector<8x72xf32>
    %c0_55 = arith.constant 0 : index
    %c0_56 = arith.constant 0 : index
    %c0_57 = arith.constant 0 : index
    %c9 = arith.constant 9 : index
    %47 = vector.load %arg3[%c0_55, %c0_56, %c0_57, %c9] : memref<1x4x8x128xbf16, #tpu.memory_space<vmem>>, vector<1x1x8x72xbf16>
    %48 = vector.shape_cast %47 : vector<1x1x8x72xbf16> to vector<8x72xbf16>
    %c8 = arith.constant 8 : index
    %c0_58 = arith.constant 0 : index
    %c0_59 = arith.constant 0 : index
    %49 = vector.load %arg4[%c8, %c0_58, %c0_59] : memref<16x8x8xbf16, #tpu.memory_space<vmem>>, vector<1x8x8xbf16>
    %50 = vector.shape_cast %49 : vector<1x8x8xbf16> to vector<8x8xbf16>
    %cst_60 = arith.constant dense<0.000000e+00> : vector<8x72xf32>
    %51 = tpu.matmul %50, %48, %cst_60 {dimension_numbers = #tpu.dot_dimension_numbers<[1], [0], [0], [1], [0, 0, 1, 1], [], []>} : vector<8x8xbf16>, vector<8x72xbf16>, vector<8x72xf32> -> vector<8x72xf32>
    %52 = arith.addf %46, %51 : vector<8x72xf32>
    %c0_61 = arith.constant 0 : index
    %c1_62 = arith.constant 1 : index
    %c0_63 = arith.constant 0 : index
    %c9_64 = arith.constant 9 : index
    %53 = vector.load %arg3[%c0_61, %c1_62, %c0_63, %c9_64] : memref<1x4x8x128xbf16, #tpu.memory_space<vmem>>, vector<1x1x8x72xbf16>
    %54 = vector.shape_cast %53 : vector<1x1x8x72xbf16> to vector<8x72xbf16>
    %c9_65 = arith.constant 9 : index
    %c0_66 = arith.constant 0 : index
    %c0_67 = arith.constant 0 : index
    %55 = vector.load %arg4[%c9_65, %c0_66, %c0_67] : memref<16x8x8xbf16, #tpu.memory_space<vmem>>, vector<1x8x8xbf16>
    %56 = vector.shape_cast %55 : vector<1x8x8xbf16> to vector<8x8xbf16>
    %cst_68 = arith.constant dense<0.000000e+00> : vector<8x72xf32>
    %57 = tpu.matmul %56, %54, %cst_68 {dimension_numbers = #tpu.dot_dimension_numbers<[1], [0], [0], [1], [0, 0, 1, 1], [], []>} : vector<8x8xbf16>, vector<8x72xbf16>, vector<8x72xf32> -> vector<8x72xf32>
    %58 = arith.addf %52, %57 : vector<8x72xf32>
    %c0_69 = arith.constant 0 : index
    %c0_70 = arith.constant 0 : index
    %c0_71 = arith.constant 0 : index
    %c10 = arith.constant 10 : index
    %59 = vector.load %arg3[%c0_69, %c0_70, %c0_71, %c10] : memref<1x4x8x128xbf16, #tpu.memory_space<vmem>>, vector<1x1x8x72xbf16>
    %60 = vector.shape_cast %59 : vector<1x1x8x72xbf16> to vector<8x72xbf16>
    %c10_72 = arith.constant 10 : index
    %c0_73 = arith.constant 0 : index
    %c0_74 = arith.constant 0 : index
    %61 = vector.load %arg4[%c10_72, %c0_73, %c0_74] : memref<16x8x8xbf16, #tpu.memory_space<vmem>>, vector<1x8x8xbf16>
    %62 = vector.shape_cast %61 : vector<1x8x8xbf16> to vector<8x8xbf16>
    %cst_75 = arith.constant dense<0.000000e+00> : vector<8x72xf32>
    %63 = tpu.matmul %62, %60, %cst_75 {dimension_numbers = #tpu.dot_dimension_numbers<[1], [0], [0], [1], [0, 0, 1, 1], [], []>} : vector<8x8xbf16>, vector<8x72xbf16>, vector<8x72xf32> -> vector<8x72xf32>
    %64 = arith.addf %58, %63 : vector<8x72xf32>
    %c0_76 = arith.constant 0 : index
    %c1_77 = arith.constant 1 : index
    %c0_78 = arith.constant 0 : index
    %c10_79 = arith.constant 10 : index
    %65 = vector.load %arg3[%c0_76, %c1_77, %c0_78, %c10_79] : memref<1x4x8x128xbf16, #tpu.memory_space<vmem>>, vector<1x1x8x72xbf16>
    %66 = vector.shape_cast %65 : vector<1x1x8x72xbf16> to vector<8x72xbf16>
    %c11 = arith.constant 11 : index
    %c0_80 = arith.constant 0 : index
    %c0_81 = arith.constant 0 : index
    %67 = vector.load %arg4[%c11, %c0_80, %c0_81] : memref<16x8x8xbf16, #tpu.memory_space<vmem>>, vector<1x8x8xbf16>
    %68 = vector.shape_cast %67 : vector<1x8x8xbf16> to vector<8x8xbf16>
    %cst_82 = arith.constant dense<0.000000e+00> : vector<8x72xf32>
    %69 = tpu.matmul %68, %66, %cst_82 {dimension_numbers = #tpu.dot_dimension_numbers<[1], [0], [0], [1], [0, 0, 1, 1], [], []>} : vector<8x8xbf16>, vector<8x72xbf16>, vector<8x72xf32> -> vector<8x72xf32>
    %70 = arith.addf %64, %69 : vector<8x72xf32>
    %c0_83 = arith.constant 0 : index
    %c2_84 = arith.constant 2 : index
    %c0_85 = arith.constant 0 : index
    %c9_86 = arith.constant 9 : index
    %71 = vector.load %arg3[%c0_83, %c2_84, %c0_85, %c9_86] : memref<1x4x8x128xbf16, #tpu.memory_space<vmem>>, vector<1x1x8x72xbf16>
    %72 = vector.shape_cast %71 : vector<1x1x8x72xbf16> to vector<8x72xbf16>
    %c12 = arith.constant 12 : index
    %c0_87 = arith.constant 0 : index
    %c0_88 = arith.constant 0 : index
    %73 = vector.load %arg4[%c12, %c0_87, %c0_88] : memref<16x8x8xbf16, #tpu.memory_space<vmem>>, vector<1x8x8xbf16>
    %74 = vector.shape_cast %73 : vector<1x8x8xbf16> to vector<8x8xbf16>
    %cst_89 = arith.constant dense<0.000000e+00> : vector<8x72xf32>
    %75 = tpu.matmul %74, %72, %cst_89 {dimension_numbers = #tpu.dot_dimension_numbers<[1], [0], [0], [1], [0, 0, 1, 1], [], []>} : vector<8x8xbf16>, vector<8x72xbf16>, vector<8x72xf32> -> vector<8x72xf32>
    %76 = arith.addf %70, %75 : vector<8x72xf32>
    %c0_90 = arith.constant 0 : index
    %c3_91 = arith.constant 3 : index
    %c0_92 = arith.constant 0 : index
    %c9_93 = arith.constant 9 : index
    %77 = vector.load %arg3[%c0_90, %c3_91, %c0_92, %c9_93] : memref<1x4x8x128xbf16, #tpu.memory_space<vmem>>, vector<1x1x8x72xbf16>
    %78 = vector.shape_cast %77 : vector<1x1x8x72xbf16> to vector<8x72xbf16>
    %c13 = arith.constant 13 : index
    %c0_94 = arith.constant 0 : index
    %c0_95 = arith.constant 0 : index
    %79 = vector.load %arg4[%c13, %c0_94, %c0_95] : memref<16x8x8xbf16, #tpu.memory_space<vmem>>, vector<1x8x8xbf16>
    %80 = vector.shape_cast %79 : vector<1x8x8xbf16> to vector<8x8xbf16>
    %cst_96 = arith.constant dense<0.000000e+00> : vector<8x72xf32>
    %81 = tpu.matmul %80, %78, %cst_96 {dimension_numbers = #tpu.dot_dimension_numbers<[1], [0], [0], [1], [0, 0, 1, 1], [], []>} : vector<8x8xbf16>, vector<8x72xbf16>, vector<8x72xf32> -> vector<8x72xf32>
    %82 = arith.addf %76, %81 : vector<8x72xf32>
    %c0_97 = arith.constant 0 : index
    %c2_98 = arith.constant 2 : index
    %c0_99 = arith.constant 0 : index
    %c10_100 = arith.constant 10 : index
    %83 = vector.load %arg3[%c0_97, %c2_98, %c0_99, %c10_100] : memref<1x4x8x128xbf16, #tpu.memory_space<vmem>>, vector<1x1x8x72xbf16>
    %84 = vector.shape_cast %83 : vector<1x1x8x72xbf16> to vector<8x72xbf16>
    %c14 = arith.constant 14 : index
    %c0_101 = arith.constant 0 : index
    %c0_102 = arith.constant 0 : index
    %85 = vector.load %arg4[%c14, %c0_101, %c0_102] : memref<16x8x8xbf16, #tpu.memory_space<vmem>>, vector<1x8x8xbf16>
    %86 = vector.shape_cast %85 : vector<1x8x8xbf16> to vector<8x8xbf16>
    %cst_103 = arith.constant dense<0.000000e+00> : vector<8x72xf32>
    %87 = tpu.matmul %86, %84, %cst_103 {dimension_numbers = #tpu.dot_dimension_numbers<[1], [0], [0], [1], [0, 0, 1, 1], [], []>} : vector<8x8xbf16>, vector<8x72xbf16>, vector<8x72xf32> -> vector<8x72xf32>
    %88 = arith.addf %82, %87 : vector<8x72xf32>
    %c0_104 = arith.constant 0 : index
    %c3_105 = arith.constant 3 : index
    %c0_106 = arith.constant 0 : index
    %c10_107 = arith.constant 10 : index
    %89 = vector.load %arg3[%c0_104, %c3_105, %c0_106, %c10_107] : memref<1x4x8x128xbf16, #tpu.memory_space<vmem>>, vector<1x1x8x72xbf16>
    %90 = vector.shape_cast %89 : vector<1x1x8x72xbf16> to vector<8x72xbf16>
    %c15 = arith.constant 15 : index
    %c0_108 = arith.constant 0 : index
    %c0_109 = arith.constant 0 : index
    %91 = vector.load %arg4[%c15, %c0_108, %c0_109] : memref<16x8x8xbf16, #tpu.memory_space<vmem>>, vector<1x8x8xbf16>
    %92 = vector.shape_cast %91 : vector<1x8x8xbf16> to vector<8x8xbf16>
    %cst_110 = arith.constant dense<0.000000e+00> : vector<8x72xf32>
    %93 = tpu.matmul %92, %90, %cst_110 {dimension_numbers = #tpu.dot_dimension_numbers<[1], [0], [0], [1], [0, 0, 1, 1], [], []>} : vector<8x8xbf16>, vector<8x72xbf16>, vector<8x72xf32> -> vector<8x72xf32>
    %94 = arith.addf %88, %93 : vector<8x72xf32>
    %95 = arith.truncf %94 : vector<8x72xf32> to vector<8x72xbf16>
    %c0_111 = arith.constant 0 : index
    %c0_112 = arith.constant 0 : index
    %c0_113 = arith.constant 0 : index
    %96 = vector.load %arg5[%c0_111, %c0_112, %c0_113] : memref<1x8x72xbf16, #tpu.memory_space<vmem>>, vector<1x8x72xbf16>
    %97 = vector.shape_cast %96 : vector<1x8x72xbf16> to vector<8x72xbf16>
    %98 = vector.shape_cast %95 : vector<8x72xbf16> to vector<1x8x72xbf16>
    tpu.vector_store %arg5[%c0_111, %c0_112, %c0_113], %98 {strides = array<i32>} : memref<1x8x72xbf16, #tpu.memory_space<vmem>>, vector<1x8x72xbf16>,
    %c0_114 = arith.constant 0 : index
    %c0_115 = arith.constant 0 : index
    %99 = vector.load %arg2[%c0_114, %c0_115] : memref<72x1xf32, #tpu.memory_space<vmem>>, vector<72x1xf32>
    %cst_116 = arith.constant dense<0.000000e+00> : vector<8x1xf32>
    %100 = tpu.matmul %94, %99, %cst_116 {dimension_numbers = #tpu.dot_dimension_numbers<[1], [0], [0], [1], [0, 0, 1, 1], [], []>} : vector<8x72xf32>, vector<72x1xf32>, vector<8x1xf32> -> vector<8x1xf32>
    %c0_117 = arith.constant 0 : index
    %c0_118 = arith.constant 0 : index
    %c0_119 = arith.constant 0 : index
    %101 = vector.load %arg6[%c0_117, %c0_118, %c0_119] : memref<1x8x1xf32, #tpu.memory_space<vmem>>, vector<1x8x1xf32>
    %102 = vector.shape_cast %101 : vector<1x8x1xf32> to vector<8x1xf32>
    %103 = vector.shape_cast %100 : vector<8x1xf32> to vector<1x8x1xf32>
    tpu.vector_store %arg6[%c0_117, %c0_118, %c0_119], %103 {strides = array<i32>} : memref<1x8x1xf32, #tpu.memory_space<vmem>>, vector<1x8x1xf32>,
    %104 = arith.mulf %94, %94 : vector<8x72xf32>
    %cst_120 = arith.constant dense<0.000000e+00> : vector<8x1xf32>
    %105 = tpu.matmul %104, %99, %cst_120 {dimension_numbers = #tpu.dot_dimension_numbers<[1], [0], [0], [1], [0, 0, 1, 1], [], []>} : vector<8x72xf32>, vector<72x1xf32>, vector<8x1xf32> -> vector<8x1xf32>
    %c0_121 = arith.constant 0 : index
    %c0_122 = arith.constant 0 : index
    %c0_123 = arith.constant 0 : index
    %106 = vector.load %arg7[%c0_121, %c0_122, %c0_123] : memref<1x8x1xf32, #tpu.memory_space<vmem>>, vector<1x8x1xf32>
    %107 = vector.shape_cast %106 : vector<1x8x1xf32> to vector<8x1xf32>
    %108 = vector.shape_cast %105 : vector<8x1xf32> to vector<1x8x1xf32>
    tpu.vector_store %arg7[%c0_121, %c0_122, %c0_123], %108 {strides = array<i32>} : memref<1x8x1xf32, #tpu.memory_space<vmem>>, vector<1x8x1xf32>,
    return
  }
  func.func @transform_0(%arg0: i32, %arg1: i32) -> (i32, i32) {
    %c0_i32 = arith.constant 0 : i32
    %c0_i32_0 = arith.constant 0 : i32
    %c0_i32_1 = arith.constant 0 : i32
    return %c0_i32, %c0_i32_0 : i32, i32
  }
  func.func @transform_1(%arg0: i32, %arg1: i32) -> (i32, i32, i32, i32) {
    %c0_i32 = arith.constant 0 : i32
    %c0_i32_0 = arith.constant 0 : i32
    %c0_i32_1 = arith.constant 0 : i32
    %c0_i32_2 = arith.constant 0 : i32
    return %arg1, %c0_i32, %c0_i32_0, %c0_i32_1 : i32, i32, i32, i32
  }
  func.func @transform_2(%arg0: i32, %arg1: i32) -> (i32, i32, i32) {
    %c0_i32 = arith.constant 0 : i32
    %c0_i32_0 = arith.constant 0 : i32
    %c0_i32_1 = arith.constant 0 : i32
    return %c0_i32, %arg0, %c0_i32_0 : i32, i32, i32
  }
  func.func @transform_3(%arg0: i32, %arg1: i32) -> (i32, i32, i32) {
    %c0_i32 = arith.constant 0 : i32
    %c0_i32_0 = arith.constant 0 : i32
    return %arg1, %arg0, %c0_i32 : i32, i32, i32
  }
  func.func @transform_4(%arg0: i32, %arg1: i32) -> (i32, i32, i32) {
    %c0_i32 = arith.constant 0 : i32
    %c0_i32_0 = arith.constant 0 : i32
    return %arg1, %arg0, %c0_i32 : i32, i32, i32
  }
  func.func @transform_5(%arg0: i32, %arg1: i32) -> (i32, i32, i32) {
    %c0_i32 = arith.constant 0 : i32
    %c0_i32_0 = arith.constant 0 : i32
    return %arg1, %arg0, %c0_i32 : i32, i32, i32
  }
}

module attributes {stable_mosaic.version = 11 : i64} {
  func.func @affine_leaky_strip_kernel(%arg0: i32, %arg1: i32, %arg2: memref<1x8x8x9xbf16, #tpu.memory_space<vmem>>, %arg3: memref<8x8x1xf32, #tpu.memory_space<vmem>>, %arg4: memref<8x8x1xf32, #tpu.memory_space<vmem>>, %arg5: memref<1x8x8x8xf32, #tpu.memory_space<vmem>>) attributes {dimension_semantics = [#tpu.dimension_semantics<parallel>, #tpu.dimension_semantics<parallel>], iteration_bounds = array<i64: 1, 2>, scalar_prefetch = 0 : i64, scratch_operands = 0 : i64, tpu.core_type = #tpu.core_type<tc>, window_params = [{transform_indices = @transform_0, window_bounds = array<i64: 1, 8, 8, 9>}, {transform_indices = @transform_1, window_bounds = array<i64: 8, 8, 1>}, {transform_indices = @transform_2, window_bounds = array<i64: 8, 8, 1>}, {transform_indices = @transform_3, window_bounds = array<i64: 1, 8, 8, 8>}]} {
    %c0 = arith.constant 0 : index
    %c0_0 = arith.constant 0 : index
    %c0_1 = arith.constant 0 : index
    %c0_2 = arith.constant 0 : index
    %0 = vector.load %arg2[%c0, %c0_0, %c0_1, %c0_2] : memref<1x8x8x9xbf16, #tpu.memory_space<vmem>>, vector<1x8x8x8xbf16>
    %1 = vector.shape_cast %0 : vector<1x8x8x8xbf16> to vector<8x8x8xbf16>
    %2 = arith.extf %1 : vector<8x8x8xbf16> to vector<8x8x8xf32>
    %c0_3 = arith.constant 0 : index
    %c0_4 = arith.constant 0 : index
    %c0_5 = arith.constant 0 : index
    %3 = vector.load %arg3[%c0_3, %c0_4, %c0_5] : memref<8x8x1xf32, #tpu.memory_space<vmem>>, vector<8x8x1xf32>
    %4 = vector.broadcast %3 : vector<8x8x1xf32> to vector<8x8x8xf32>
    %5 = arith.mulf %2, %4 : vector<8x8x8xf32>
    %c0_6 = arith.constant 0 : index
    %c0_7 = arith.constant 0 : index
    %c0_8 = arith.constant 0 : index
    %6 = vector.load %arg4[%c0_6, %c0_7, %c0_8] : memref<8x8x1xf32, #tpu.memory_space<vmem>>, vector<8x8x1xf32>
    %7 = vector.broadcast %6 : vector<8x8x1xf32> to vector<8x8x8xf32>
    %8 = arith.addf %5, %7 : vector<8x8x8xf32>
    %cst = arith.constant 0.000000e+00 : f32
    %9 = vector.broadcast %cst : f32 to vector<8x8x8xf32>
    %10 = arith.cmpf oge, %8, %9 : vector<8x8x8xf32>
    %cst_9 = arith.constant 2.000000e-01 : f32
    %11 = vector.broadcast %cst_9 : f32 to vector<8x8x8xf32>
    %12 = arith.mulf %11, %8 : vector<8x8x8xf32>
    %13 = arith.select %10, %8, %12 : vector<8x8x8xi1>, vector<8x8x8xf32>
    %c0_10 = arith.constant 0 : index
    %c0_11 = arith.constant 0 : index
    %c0_12 = arith.constant 0 : index
    %c0_13 = arith.constant 0 : index
    %14 = vector.load %arg5[%c0_10, %c0_11, %c0_12, %c0_13] : memref<1x8x8x8xf32, #tpu.memory_space<vmem>>, vector<1x8x8x8xf32>
    %15 = vector.shape_cast %14 : vector<1x8x8x8xf32> to vector<8x8x8xf32>
    %16 = vector.shape_cast %13 : vector<8x8x8xf32> to vector<1x8x8x8xf32>
    tpu.vector_store %arg5[%c0_10, %c0_11, %c0_12, %c0_13], %16 {strides = array<i32>} : memref<1x8x8x8xf32, #tpu.memory_space<vmem>>, vector<1x8x8x8xf32>,
    return
  }
  func.func @transform_0(%arg0: i32, %arg1: i32) -> (i32, i32, i32, i32) {
    %c0_i32 = arith.constant 0 : i32
    %c0_i32_0 = arith.constant 0 : i32
    %c0_i32_1 = arith.constant 0 : i32
    return %arg1, %arg0, %c0_i32, %c0_i32_0 : i32, i32, i32, i32
  }
  func.func @transform_1(%arg0: i32, %arg1: i32) -> (i32, i32, i32) {
    %c0_i32 = arith.constant 0 : i32
    %c0_i32_0 = arith.constant 0 : i32
    %c0_i32_1 = arith.constant 0 : i32
    return %arg0, %c0_i32, %c0_i32_0 : i32, i32, i32
  }
  func.func @transform_2(%arg0: i32, %arg1: i32) -> (i32, i32, i32) {
    %c0_i32 = arith.constant 0 : i32
    %c0_i32_0 = arith.constant 0 : i32
    %c0_i32_1 = arith.constant 0 : i32
    return %arg0, %c0_i32, %c0_i32_0 : i32, i32, i32
  }
  func.func @transform_3(%arg0: i32, %arg1: i32) -> (i32, i32, i32, i32) {
    %c0_i32 = arith.constant 0 : i32
    %c0_i32_0 = arith.constant 0 : i32
    %c0_i32_1 = arith.constant 0 : i32
    return %arg1, %arg0, %c0_i32, %c0_i32_0 : i32, i32, i32, i32
  }
}

</mosaic_0001>

<bundles_post_ra>
// kernel: c_k_forward.3
= control target key start
LH: loop header
LB: loop body
LE: loop exit
PB: predicated region body
PF: predicated region fallthrough
CT: control target
= control target key end

     0   :  { %8 = vsyncpa [#allocation3], 0  ;;  %s913_s0 = inlined_call_operand.vmem [shape: bf16[2,8,8,9], index: 0, kind: input, shape index: {}]   ;;  %s914_s1 = inlined_call_operand.vmem [shape: f32[8,8,1], index: 1, kind: input, shape index: {}]   ;;  %s915_s2 = inlined_call_operand.vmem [shape: f32[8,8,1], index: 2, kind: input, shape index: {}]   ;;  %s916_s3 = inlined_call_operand.hbm [shape: f32[2,8,8,8], index: 3, kind: output, shape index: {}]  }
   0x1   :  { %10 = vsyncpa [#allocation3 + $0x1], 0  ;;  %s728_s12 = smov 0   ;;  %s730_s13 = smov 0  }
   0x2   :  { %s732_s14 = smov 0   ;;  %s734_s15 = smov 0  }
   0x3   :  { %s736_s16 = smov 0   ;;  %s738_s17 = smov 0  }
   0x4 LB: > { %s530_s18 = sadd.s32 4294967295, %s702_s17   ;;  %s531_s19 = sadd.s32 4294967294, %s702_s17   ;;  %s702_s17 = sphi %s738_s17, %s16_s17   ;;  %s698_s16 = sphi %s736_s16, %s923_s16   ;;  %s694_s15 = sphi %s734_s15, %s922_s15   ;;  %s690_s14 = sphi %s732_s14, %s921_s14   ;;  %s686_s13 = sphi %s730_s13, %s920_s13   ;;  %s682_s12 = sphi %s728_s12, %s919_s12  }
   0x5   : > { %s25_s20 = sadd.s32 1, %s698_s16  ;;  %s117_s21 = sadd.s32 1, %s690_s14 }
   0x6   : > { %p26_p0 = scmp.ge.s32.totalorder %s25_s20, 2  ;;  %p127_p1 = scmp.ne.s32.totalorder %s690_s14, %s686_s13 }
   0x7   : > { %p128_p2 = scmp.eq.s32.totalorder %s530_s18, 1  ;;  %p133_p3 = scmp.ne.s32.totalorder %s686_s13, %s682_s12 }
   0x8   : > { %s925_s20 = smov (%p26_p0, %s25_s20), 0  ;;  %p134_p5 = scmp.eq.s32.totalorder %s531_s19, 1 }
   0x9   : > { %p768_p4 = por %p128_p2, %p127_p1  ;;  %s112_s23 = ssub.s32 %s698_s16, %s925_s20 }
   0xa   : > { %p536_p6 = scmp.ge.s32.totalorder %s702_s17, 1  ;;  %p115_p7 = scmp.eq.s32.totalorder %s112_s23, 0 }
   0xb   : > { %p775_p8 = por %p134_p5, %p133_p3  ;;  %p183_p9 = scmp.lt.s32.totalorder %s702_s17, 3 }
   0xc   : > { %s781_s25 = scalar_select %p115_p7, %s690_s14, %s117_s21  }
   0xd   : > { %p184_p10 = pnand %p536_p6, %p183_p9 }
   0xe   : > { %p222_p11 = scmp.lt.s32.totalorder (!%p184_p10), %s694_s15, 1  ;;  %s218_s29 = sand.u32 (!%p184_p10), 1, %s686_s13  }
   0xf   : > { %187 = sbr.rel (%p184_p10) target bundleno = 193 (0xc1), region = 32  ;;  %s537_s30 = sshll.u32 (!%p184_p10), %s218_s29, 6 }
  0x10   : > { %s839_s4 = scalar_lea.vmem (!%p184_p10), [#allocation2], %s537_s30  ;;  %s546_s5 = sshll.u32 (!%p184_p10), %s694_s15, 10 }
  0x11   : > { %s421_s6 = sshll.u32 (!%p184_p10), %s839_s4, 4  ;;  %s868_s9 = scalar_lea.sflag (!%p184_p10), [#allocation3], %s218_s29  ;;  %s860_s6 = int_to_ptr.vmem [resolvable:$true] %s421_s6 }
  0x12   : > { %s626_s10 = scalar_lea.vmem (!%p184_p10), %s860_s6, 1024  ;;  %s705_s11 = smov (!%p184_p10), [#allocation2]  }
  0x13   : > { %p627_p12 = scmp.ne.s32.totalorder (!%p184_p10), %s860_s6, %s626_s10  ;;  %s630_s18 = sshll.u32 (!%p184_p10), %s705_s11, 4  ;;  %s631_s18 = int_to_ptr.vmem [resolvable:$false] %s630_s18 }
  0x14   : > { %v262_v0 = vld [vmem:[%s914_s1 + $0x10] sm:$0xff]  ;;  %v260_v1 = vld [vmem:[%s914_s1] sm:$0xff]  ;;  %v704_v2 = vmov 0   ;;  %v263_v3 = vld [vmem:[%s914_s1 + $0x18] sm:$0xff]  ;;  %s223_s21 = scalar_select %p222_p11, %s694_s15, 1  ;;  %vm396_vm0 = vcmask 64512  }
  0x15   : > { %625 = vset.pattern.permute.xlu1 %v704_v2  ;;  %624 = vset.pattern.permute.xlu0 %v704_v2  ;;  %v261_v4 = vld [vmem:[%s914_s1 + $0x8] sm:$0xff]  ;;  %v264_v6 = vld [vmem:[%s914_s1 + $0x20] sm:$0xff]  ;;  %v267_v7 = vld [vmem:[%s914_s1 + $0x38] sm:$0xff]  ;;  %s858_s15 = scalar_lea.hbm %s916_s3, %s546_s5  ;;  %p628_p13 = pnand %p627_p12, %p768_p4 }
  0x16   : > { %280 = vperm.xlu1 %625, %v262_v0   ;;  %270 = vperm.xlu0 %624, %v260_v1   ;;  %v265_v5 = vld [vmem:[%s914_s1 + $0x28] sm:$0xff]  ;;  %v266_v8 = vld [vmem:[%s914_s1 + $0x30] sm:$0xff]  ;;  %v316_v10 = vld [vmem:[%s915_s2] sm:$0xff]  ;;  %s545_s23 = sshll.u32 %s223_s21, 5  ;;  %s632_s19 = scalar_lea.vmem %s631_s18, 2048 }
  0x17   : > { %v317_v9 = vld [vmem:[%s915_s2 + $0x8] sm:$0xff]  ;;  %v319_v11 = vld [vmem:[%s915_s2 + $0x18] sm:$0xff]  ;;  %v318_v12 = vld [vmem:[%s915_s2 + $0x10] sm:$0xff]  ;;  %s229_s28 = scalar_lea.vmem %s913_s0, %s545_s23  ;;  %p629_p0 = pneg %p628_p13 }
  0x18   : > { %v321_v13 = vld [vmem:[%s915_s2 + $0x28] sm:$0xff]  ;;  %v320_v14 = vld [vmem:[%s915_s2 + $0x20] sm:$0xff]  ;;  %v323_v15 = vld [vmem:[%s915_s2 + $0x38] sm:$0xff]  ;;  %p633_p1 = scmp.lt.s32.totalorder %s860_s6, %s631_s18  ;;  %p634_p2 = scmp.lt.s32.totalorder %s632_s19, %s626_s10 }
  0x19   : > { %v322_v16 = vld [vmem:[%s915_s2 + $0x30] sm:$0xff]  ;;  %v548_v21 = vld [vmem:[%s229_s28] sm:$0xff]   ;;  %v563_v24 = vld [vmem:[%s229_s28 + $0x8] sm:$0xff]  }
  0x1a   : > { %285 = vperm.xlu1 %625, %v263_v3   ;;  %275 = vperm.xlu0 %624, %v261_v4   ;;  %v549_v25 = vunpack.c.l.bf16 %v548_v21  ;;  %v550_v26 = vunpack.c.h.bf16 %v548_v21  ;;  %v553_v29 = vunpack.c.l.bf16 %v563_v24  ;;  %v554_v30 = vunpack.c.h.bf16 %v563_v24  ;;  %v564_v31 = vld [vmem:[%s229_s28 + $0x10] sm:$0xff]   ;;  %v565_v42 = vld [vmem:[%s229_s28 + $0x18] sm:$0xff]   ;;  %p635_p3 = por %p634_p2, %p633_p1 }
  0x1b   : > { %v558_v36 = vunpack.c.h.bf16 %v564_v31  ;;  %v557_v41 = vunpack.c.l.bf16 %v564_v31  ;;  %v562_v53 = vunpack.c.h.bf16 %v565_v42  ;;  %v561_v54 = vunpack.c.l.bf16 %v565_v42 }
  0x1c   : > { %p636_p5 = pnand %p635_p3, %p629_p0 }
  0x1e   : > { %295 = vperm.xlu1 %625, %v265_v5   ;;  %290 = vperm.xlu0 %624, %v264_v6  }
  0x22   : > { %305 = vperm.xlu1 %625, %v267_v7   ;;  %300 = vperm.xlu0 %624, %v266_v8  }
  0x26   : > { %331 = vperm.xlu1 %625, %v317_v9   ;;  %326 = vperm.xlu0 %624, %v316_v10  }
  0x2a   : > { %341 = vperm.xlu1 %625, %v319_v11   ;;  %336 = vperm.xlu0 %624, %v318_v12  }
  0x2e   : > { %351 = vperm.xlu1 %625, %v321_v13   ;;  %346 = vperm.xlu0 %624, %v320_v14  }
  0x32   : > { %361 = vperm.xlu1 %625, %v323_v15   ;;  %356 = vperm.xlu0 %624, %v322_v16  }
  0x91   : > { %v281_v17 = vpop.permute.xlu1 %280  ;;  %v271_v18 = vpop.permute.xlu0 %270 }
  0x92   : > { %v308_v32 = vmul.f32 %v549_v25, %v271_v18  ;;  %v310_v39 = vmul.f32 %v553_v29, %v281_v17 }
  0x95   : > { %v286_v19 = vpop.permute.xlu1 %285  ;;  %v276_v20 = vpop.permute.xlu0 %275 }
  0x96   : > { %v309_v33 = vmul.f32 %v550_v26, %v276_v20  ;;  %v311_v40 = vmul.f32 %v554_v30, %v286_v19 }
  0x99   : > { %v296_v22 = vpop.permute.xlu1 %295  ;;  %v291_v23 = vpop.permute.xlu0 %290 }
  0x9a   : > { %v313_v51 = vmul.f32 %v558_v36, %v296_v22  ;;  %v312_v52 = vmul.f32 %v557_v41, %v291_v23 }
  0x9d   : > { %v306_v27 = vpop.permute.xlu1 %305  ;;  %v301_v28 = vpop.permute.xlu0 %300 }
  0x9e   : > { %v315_v63 = vmul.f32 %v562_v53, %v306_v27  ;;  %v314_v0 = vmul.f32 %v561_v54, %v301_v28 }
  0xa1   : > { %v332_v34 = vpop.permute.xlu1 %331  ;;  %v327_v35 = vpop.permute.xlu0 %326 }
  0xa2   : > { %v365_v37 = vadd.f32 %v332_v34, %v309_v33  ;;  %v364_v38 = vadd.f32 %v327_v35, %v308_v32 }
  0xa4   : > { %vm373_vm1 = vcmp.ge.f32.partialorder %v365_v37, 0.0  ;;  %v381_v43 = vmul.f32 0.2, %v365_v37  ;;  %vm372_vm2 = vcmp.ge.f32.partialorder %v364_v38, 0.0  ;;  %v380_v44 = vmul.f32 0.2, %v364_v38 }
  0xa5   : > { %v342_v45 = vpop.permute.xlu1 %341  ;;  %v337_v46 = vpop.permute.xlu0 %336 }
  0xa6   : > { %v389_v47 = vsel %vm373_vm1, %v365_v37, %v381_v43  ;;  %v388_v48 = vsel %vm372_vm2, %v364_v38, %v380_v44  ;;  %v367_v49 = vadd.f32 %v342_v45, %v311_v40  ;;  %v366_v50 = vadd.f32 %v337_v46, %v310_v39 }
  0xa7   : > { %398 = vst.msk [vmem:[%s839_s4 + $0x8] sm:$0xff] %vm396_vm0, %v389_v47  ;;  %397 = vst.msk [vmem:[%s839_s4] sm:$0xff] %vm396_vm0, %v388_v48 }
  0xa8   : > { %vm375_vm3 = vcmp.ge.f32.partialorder %v367_v49, 0.0  ;;  %v383_v55 = vmul.f32 0.2, %v367_v49  ;;  %vm374_vm4 = vcmp.ge.f32.partialorder %v366_v50, 0.0  ;;  %v382_v56 = vmul.f32 0.2, %v366_v50 }
  0xa9   : > { %v352_v57 = vpop.permute.xlu1 %351  ;;  %v347_v58 = vpop.permute.xlu0 %346 }
  0xaa   : > { %v391_v59 = vsel %vm375_vm3, %v367_v49, %v383_v55  ;;  %v390_v60 = vsel %vm374_vm4, %v366_v50, %v382_v56  ;;  %v369_v61 = vadd.f32 %v352_v57, %v313_v51  ;;  %v368_v62 = vadd.f32 %v347_v58, %v312_v52 }
  0xab   : > { %400 = vst.msk [vmem:[%s839_s4 + $0x18] sm:$0xff] %vm396_vm0, %v391_v59  ;;  %399 = vst.msk [vmem:[%s839_s4 + $0x10] sm:$0xff] %vm396_vm0, %v390_v60 }
  0xac   : > { %vm377_vm5 = vcmp.ge.f32.partialorder %v369_v61, 0.0  ;;  %v385_v1 = vmul.f32 0.2, %v369_v61  ;;  %vm376_vm6 = vcmp.ge.f32.partialorder %v368_v62, 0.0  ;;  %v384_v2 = vmul.f32 0.2, %v368_v62 }
  0xad   : > { %v362_v3 = vpop.permute.xlu1 %361  ;;  %v357_v4 = vpop.permute.xlu0 %356 }
  0xae   : > { %v393_v5 = vsel %vm377_vm5, %v369_v61, %v385_v1  ;;  %v392_v6 = vsel %vm376_vm6, %v368_v62, %v384_v2  ;;  %v371_v7 = vadd.f32 %v362_v3, %v315_v63  ;;  %v370_v8 = vadd.f32 %v357_v4, %v314_v0 }
  0xaf   : > { %402 = vst.msk [vmem:[%s839_s4 + $0x28] sm:$0xff] %vm396_vm0, %v393_v5  ;;  %401 = vst.msk [vmem:[%s839_s4 + $0x20] sm:$0xff] %vm396_vm0, %v392_v6 }
  0xb0   : > { %vm379_vm7 = vcmp.ge.f32.partialorder %v371_v7, 0.0  ;;  %v387_v9 = vmul.f32 0.2, %v371_v7  ;;  %vm378_vm8 = vcmp.ge.f32.partialorder %v370_v8, 0.0  ;;  %v386_v10 = vmul.f32 0.2, %v370_v8 }
  0xb2   : > { %v395_v11 = vsel %vm379_vm7, %v371_v7, %v387_v9  ;;  %v394_v12 = vsel %vm378_vm8, %v370_v8, %v386_v10 }
  0xb3   : > { %404 = vst.msk [vmem:[%s839_s4 + $0x38] sm:$0xff] %vm396_vm0, %v395_v11  ;;  %403 = vst.msk [vmem:[%s839_s4 + $0x30] sm:$0xff] %vm396_vm0, %v394_v12 }
  0xb4   : > { %639 = shalt.err (!%p636_p5)
}
  0xb5   : > { %s640_s21 = scalar_lea.hbm %s858_s15, 1024  ;;  %s644_s27 = scalar_lea.hbm %s916_s3, 2048 }
  0xb6   : > { %p641_p6 = scmp.ne.s32.totalorder %s858_s15, %s640_s21  ;;  %p645_p10 = scmp.lt.s32.totalorder %s858_s15, %s916_s3 }
  0xb7   : > { %p646_p11 = scmp.lt.s32.totalorder %s644_s27, %s640_s21 }
  0xb8   : > { %p642_p7 = pnand %p641_p6, %p768_p4 }
  0xb9   : > { %p647_p12 = por %p646_p11, %p645_p10 }
  0xba   : > { %p643_p9 = pneg %p642_p7 }
  0xbc   : > { %p648_p13 = pnand %p647_p12, %p643_p9 }
  0xbe   : > { %651 = shalt.err (!%p648_p13)
}
  0xbf   : > { %s706_s30 = smov 128   ;;  %s707_s4 = smov 8  }
  0xc0   : > { %566 = dma.vmem_to_hbm [thread:$0]  (%p768_p4), %s860_s6, 1024, %s858_s15, %s868_s9, %s706_s30, %s706_s30, %s707_s4  }
  0xc1 PF: > { %p572_p0 = scmp.ge.s32.totalorder %s702_s17, 2  ;;  %s436_s5 = sand.u32 1, %s682_s12  }
  0xc2   : > { %s437_s7 = scalar_lea.sflag [#allocation3], %s436_s5 }
  0xc3   : > { %p569_p1 = pnand %p572_p0, %p775_p8 }
  0xc5   : > { %p570_p2 = pneg %p569_p1 }
  0xc7   : > { %677 = dma.done.wait (%p570_p2), %s437_s7, 1024  }
  0xc8   : > { %679 = vsyncadd (%p570_p2), %s437_s7, 4294966272  ;;  %s16_s17 = sadd.s32 1, %s702_s17   ;;  %s919_s12 = smov %s686_s13 }
  0xc9   : > { %p13_p3 = scmp.ge.s32.totalorder %s16_s17, 4   ;;  %s920_s13 = smov %s690_s14 }
  0xca   : > { %s921_s14 = smov %s781_s25  ;;  %s922_s15 = smov %s698_s16 }
  0xcb   : > { %s923_s16 = smov %s925_s20  ;;  %15 = sbr.rel (!%p13_p3) target bundleno = 4 (0x4), region = 73 }
  0xd0   :  { %442 = vsyncpa [#allocation3], 1 }
  0xd1   :  { %444 = vsyncpa [#allocation3 + $0x1], 1 }

// kernel: c_k_forward.2
= control target key start
LH: loop header
LB: loop body
LE: loop exit
PB: predicated region body
PF: predicated region fallthrough
CT: control target
= control target key end

     0   :  { %s1792_s18 = smov 0   ;;  %s1794_s19 = smov 0   ;;  %s2016_s0 = inlined_call_operand.vmem [shape: f32[72,1], index: 0, kind: input, shape index: {}]   ;;  %s2017_s1 = inlined_call_operand.vmem [shape: bf16[2,4,8,128], index: 1, kind: input, shape index: {}]   ;;  %s2018_s2 = inlined_call_operand.vmem [shape: bf16[16,8,8], index: 2, kind: input, shape index: {}]   ;;  %s2019_s3 = inlined_call_operand.vmem [shape: bf16[2,8,72], index: 3, kind: output, shape index: {0}]   ;;  %s2020_s4 = inlined_call_operand.vmem [shape: f32[2,8,1], index: 4, kind: output, shape index: {1}]   ;;  %s2021_s5 = inlined_call_operand.vmem [shape: f32[2,8,1], index: 5, kind: output, shape index: {2}]  }
   0x1   :  { %s1796_s20 = smov 0  }
   0x2 LB: > { %s25_s21 = sadd.s32 1, %s1751_s19  ;;  %p1461_p0 = scmp.ge.s32.totalorder %s1755_s20, 1  ;;  %s1755_s20 = sphi %s1796_s20, %s16_s20   ;;  %s1751_s19 = sphi %s1794_s19, %s2023_s19   ;;  %s1747_s18 = sphi %s1792_s18, %s2022_s18  }
   0x3   : > { %p26_p1 = scmp.ge.s32.totalorder %s25_s21, 2  ;;  %p219_p2 = scmp.lt.s32.totalorder %s1755_s20, 3 }
   0x5   : > { %s2025_s21 = smov (%p26_p1, %s25_s21), 0  ;;  %p220_p3 = pnand %p1461_p0, %p219_p2 }
   0x6   : > { %p267_p4 = scmp.lt.s32.totalorder (!%p220_p3), %s1747_s18, 1  ;;  %s1759_s28 = smov (!%p220_p3), 127  }
   0x7   : > { %223 = sbr.rel (%p220_p3) target bundleno = 581 (0x245), region = 32  ;;  %s1760_s6 = smov (!%p220_p3), 119  }
   0x8   : > { %s1761_s7 = smov (!%p220_p3), 118  }
   0xc   : > { %v1757_v0 = vmov 0.0   ;;  %vm1758_vm0 = vmmov 0   ;;  %s2027_s18 = smov (!%p267_p4, %s1747_s18), 1  ;;  %vm308_vm1 = vcmask 1043456   ;;  %v1468_v8 = vld [vmem:[%s2018_s2 + $0x4] sm:$0xf] }
   0xd   : > { %1562 = vmatprep.subr.bf16.mxu0 %v1757_v0  ;;  %1564 = vmatprep.mubr.msk.bf16.mxu0 %vm1758_vm0, %v1757_v0  ;;  %s1509_s22 = sshll.u32 %s2027_s18, 4  ;;  %vm304_vm2 = vcmask 64512   ;;  %v299_v12 = vld [vmem:[%s2018_s2] sm:$0xf]  ;;  %v1471_v15 = vld [vmem:[%s2018_s2 + $0x8] sm:$0xf] }
   0xe   : > { %1568 = vmatprep.subr.bf16.mxu1 %v1757_v0  ;;  %1570 = vmatprep.mubr.msk.bf16.mxu1 %vm1758_vm0, %v1757_v0  ;;  %s271_s25 = scalar_lea.vmem %s2017_s1, %s1509_s22  ;;  %v1474_v19 = vld [vmem:[%s2018_s2 + $0xc] sm:$0xf]  ;;  %v1478_v22 = vld [vmem:[%s2018_s2 + $0x10] sm:$0xf]  ;;  %v1481_v25 = vld [vmem:[%s2018_s2 + $0x14] sm:$0xf] }
   0xf   : > { %v298_v1 = vld [vmem:[%s271_s25] sm:$0xf]  ;;  %v1467_v2 = vld [vmem:[%s271_s25 + $0x4] sm:$0xf]  ;;  %v1477_v3 = vld [vmem:[%s271_s25 + $0x8] sm:$0xf] }
  0x10   : > { %v1472_v4 = vcombine.low %v298_v1, %v298_v1  ;;  %v1484_v5 = vcombine.low %v1477_v3, %v1477_v3  ;;  %v1480_v6 = vld [vmem:[%s271_s25 + $0xc] sm:$0xf]  ;;  %v310_v7 = vsel %vm308_vm1, %v1467_v2, 0  ;;  %v356_v9 = vsel %vm308_vm1, %v298_v1, 0  ;;  %v1483_v28 = vld [vmem:[%s2018_s2 + $0x18] sm:$0xf] }
  0x11   : > { %1563 = vmatpush3.bf16.msra.mxu0 %v310_v7  ;;  %v1475_v10 = vcombine.low %v1467_v2, %v1467_v2  ;;  %v1487_v11 = vcombine.low %v1480_v6, %v1480_v6  ;;  %1569 = vmatpush3.bf16.msra.mxu1 %v356_v9  ;;  %v514_v16 = vsel %vm308_vm1, %v1477_v3, 0  ;;  %v565_v21 = vsel %vm308_vm1, %v1480_v6, 0  ;;  %v1486_v31 = vld [vmem:[%s2018_s2 + $0x1c] sm:$0xf]  ;;  %v1489_v34 = vld [vmem:[%s2018_s2 + $0x20] sm:$0xf] }
  0x12   : > { %403 = vrot.lane.b32.xlu0 %v1472_v4, %s1759_s28  ;;  %613 = vrot.lane.b32.xlu1 %v1484_v5, %s1759_s28  ;;  %v1491_v37 = vld [vmem:[%s2018_s2 + $0x24] sm:$0xf]  ;;  %v1493_v40 = vld [vmem:[%s2018_s2 + $0x28] sm:$0xf]  ;;  %s1464_s12 = sshll.u32 %s2027_s18, 2  ;;  %vm1136_vm3 = vcmask 588800  }
  0x13   : > { %1574 = vmatprep.subr.bf16.mxu0 %v1757_v0  ;;  %1580 = vmatprep.subr.bf16.mxu1 %v1757_v0  ;;  %v1495_v43 = vld [vmem:[%s2018_s2 + $0x2c] sm:$0xf]  ;;  %v1497_v46 = vld [vmem:[%s2018_s2 + $0x30] sm:$0xf]  ;;  %v1499_v49 = vld [vmem:[%s2018_s2 + $0x34] sm:$0xf]  ;;  %s282_s15 = scalar_lea.vmem %s2019_s3, %s1464_s12 }
  0x14   : > { %1565 = vmatmul.mubr.msk.bf16.vlgmr.msra.gmra.mxu0 %vm304_vm2, %v1468_v8  ;;  %1571 = vmatmul.mubr.msk.bf16.vlgmr.msra.gmra.mxu1 %vm304_vm2, %v299_v12  ;;  %v1501_v51 = vld [vmem:[%s2018_s2 + $0x38] sm:$0xf]  ;;  %v1503_v52 = vld [vmem:[%s2018_s2 + $0x3c] sm:$0xf]  ;;  %v1135_v62 = vld [vmem:[%s2016_s0 + $0x40] sm:$0xff]  ;;  %vm1125_vm4 = vcmask 584704  }
  0x15   : > { %1576 = vmatprep.mubr.msk.bf16.mxu0 %vm1758_vm0, %v1757_v0  ;;  %1582 = vmatprep.mubr.msk.bf16.mxu1 %vm1758_vm0, %v1757_v0  ;;  %v1134_v63 = vld [vmem:[%s2016_s0 + $0x38] sm:$0xff]  ;;  %v1133_v1 = vld [vmem:[%s2016_s0 + $0x30] sm:$0xff]  ;;  %v1132_v2 = vld [vmem:[%s2016_s0 + $0x28] sm:$0xff]  ;;  %s1465_s16 = sshll.u32 %s2027_s18, 3  ;;  %vm1210_vm5 = vcmask 7168  }
  0x16   : > { %457 = vrot.lane.b32.xlu0 %v1475_v10, %s1759_s28  ;;  %667 = vrot.lane.b32.xlu1 %v1487_v11, %s1759_s28  ;;  %v1131_v3 = vld [vmem:[%s2016_s0 + $0x20] sm:$0xff]  ;;  %v1128_v6 = vld [vmem:[%s2016_s0 + $0x8] sm:$0xff]  ;;  %s289_s23 = scalar_lea.vmem %s2020_s4, %s1465_s16  ;;  %s296_s26 = scalar_lea.vmem %s2021_s5, %s1465_s16 }
  0x17   : > { %v1127_v7 = vld [vmem:[%s2016_s0] sm:$0xff] }
  0x1a   : > { %718 = vrot.lane.b32.xlu0 %v1472_v4, %s1760_s6  ;;  %769 = vrot.lane.b32.xlu1 %v1475_v10, %s1760_s6 }
  0x1e   : > { %820 = vrot.lane.b32.xlu0 %v1472_v4, %s1761_s7  ;;  %871 = vrot.lane.b32.xlu1 %v1475_v10, %s1761_s7  ;;  %v1130_v4 = vld [vmem:[%s2016_s0 + $0x18] sm:$0xff] }
  0x22   : > { %922 = vrot.lane.b32.xlu0 %v1484_v5, %s1760_s6  ;;  %973 = vrot.lane.b32.xlu1 %v1487_v11, %s1760_s6 }
  0x26   : > { %1024 = vrot.lane.b32.xlu0 %v1484_v5, %s1761_s7  ;;  %1075 = vrot.lane.b32.xlu1 %v1487_v11, %s1761_s7  ;;  %v1129_v5 = vld [vmem:[%s2016_s0 + $0x10] sm:$0xff] }
  0x84   : > { %v404_v13 = vpop.permute.xlu0 %403  ;;  %v614_v20 = vpop.permute.xlu1 %613 }
  0x85   : > { %v409_v14 = vsel %vm308_vm1, %v404_v13, 0  ;;  %v619_v23 = vsel %vm308_vm1, %v614_v20, 0 }
  0x86   : > { %1575 = vmatpush3.bf16.msra.mxu0 %v409_v14 }
  0x87   : > { %1586 = vmatprep.subr.bf16.mxu0 %v1757_v0 }
  0x88   : > { %v458_v17 = vpop.permute.xlu0 %457  ;;  %v668_v24 = vpop.permute.xlu1 %667 }
  0x89   : > { %v463_v18 = vsel %vm308_vm1, %v458_v17, 0  ;;  %1577 = vmatmul.mubr.msk.bf16.vlgmr.msra.gmra.mxu0 %vm304_vm2, %v1471_v15  ;;  %v673_v26 = vsel %vm308_vm1, %v668_v24, 0 }
  0x8a   : > { %1581 = vmatpush3.bf16.msra.mxu1 %v463_v18  ;;  %1587 = vmatpush3.bf16.msra.mxu0 %v514_v16 }
  0x8b   : > { %1588 = vmatprep.mubr.msk.bf16.mxu0 %vm1758_vm0, %v1757_v0  ;;  %1592 = vmatprep.subr.bf16.mxu1 %v1757_v0 }
  0x8c   : > { %1598 = vmatprep.subr.bf16.mxu0 %v1757_v0  ;;  %v719_v27 = vpop.permute.xlu0 %718  ;;  %v770_v30 = vpop.permute.xlu1 %769 }
  0x8d   : > { %1583 = vmatmul.mubr.msk.bf16.vlgmr.msra.gmra.mxu1 %vm304_vm2, %v1474_v19  ;;  %v724_v29 = vsel %vm308_vm1, %v719_v27, 0  ;;  %v775_v32 = vsel %vm308_vm1, %v770_v30, 0 }
  0x8e   : > { %1593 = vmatpush3.bf16.msra.mxu1 %v565_v21  ;;  %1594 = vmatprep.mubr.msk.bf16.mxu1 %vm1758_vm0, %v1757_v0 }
  0x8f   : > { %1604 = vmatprep.subr.bf16.mxu1 %v1757_v0 }
  0x90   : > { %v821_v33 = vpop.permute.xlu0 %820  ;;  %v872_v36 = vpop.permute.xlu1 %871 }
  0x91   : > { %1589 = vmatmul.mubr.msk.bf16.vlgmr.msra.gmra.mxu0 %vm304_vm2, %v1478_v22  ;;  %v826_v35 = vsel %vm308_vm1, %v821_v33, 0  ;;  %v877_v38 = vsel %vm308_vm1, %v872_v36, 0 }
  0x92   : > { %1599 = vmatpush3.bf16.msra.mxu0 %v619_v23  ;;  %1600 = vmatprep.mubr.msk.bf16.mxu0 %vm1758_vm0, %v1757_v0 }
  0x93   : > { %1610 = vmatprep.subr.bf16.mxu0 %v1757_v0 }
  0x94   : > { %v923_v39 = vpop.permute.xlu0 %922  ;;  %v974_v42 = vpop.permute.xlu1 %973 }
  0x95   : > { %1595 = vmatmul.mubr.msk.bf16.vlgmr.msra.gmra.mxu1 %vm304_vm2, %v1481_v25  ;;  %v928_v41 = vsel %vm308_vm1, %v923_v39, 0  ;;  %v979_v44 = vsel %vm308_vm1, %v974_v42, 0 }
  0x96   : > { %1605 = vmatpush3.bf16.msra.mxu1 %v673_v26  ;;  %1606 = vmatprep.mubr.msk.bf16.mxu1 %vm1758_vm0, %v1757_v0 }
  0x97   : > { %1616 = vmatprep.subr.bf16.mxu1 %v1757_v0 }
  0x98   : > { %v1025_v45 = vpop.permute.xlu0 %1024  ;;  %v1076_v48 = vpop.permute.xlu1 %1075 }
  0x99   : > { %1601 = vmatmul.mubr.msk.bf16.vlgmr.msra.gmra.mxu0 %vm304_vm2, %v1483_v28  ;;  %v1030_v47 = vsel %vm308_vm1, %v1025_v45, 0  ;;  %v1081_v50 = vsel %vm308_vm1, %v1076_v48, 0 }
  0x9a   : > { %1611 = vmatpush3.bf16.msra.mxu0 %v724_v29  ;;  %1612 = vmatprep.mubr.msk.bf16.mxu0 %vm1758_vm0, %v1757_v0 }
  0x9b   : > { %1622 = vmatprep.subr.bf16.mxu0 %v1757_v0 }
  0x9d   : > { %1607 = vmatmul.mubr.msk.bf16.vlgmr.msra.gmra.mxu1 %vm304_vm2, %v1486_v31 }
  0x9e   : > { %1617 = vmatpush3.bf16.msra.mxu1 %v775_v32  ;;  %1618 = vmatprep.mubr.msk.bf16.mxu1 %vm1758_vm0, %v1757_v0 }
  0x9f   : > { %1628 = vmatprep.subr.bf16.mxu1 %v1757_v0 }
  0xa1   : > { %1613 = vmatmul.mubr.msk.bf16.vlgmr.msra.gmra.mxu0 %vm304_vm2, %v1489_v34 }
  0xa2   : > { %1623 = vmatpush3.bf16.msra.mxu0 %v826_v35  ;;  %1624 = vmatprep.mubr.msk.bf16.mxu0 %vm1758_vm0, %v1757_v0 }
  0xa3   : > { %1634 = vmatprep.subr.bf16.mxu0 %v1757_v0 }
  0xa5   : > { %1619 = vmatmul.mubr.msk.bf16.vlgmr.msra.gmra.mxu1 %vm304_vm2, %v1491_v37 }
  0xa6   : > { %1629 = vmatpush3.bf16.msra.mxu1 %v877_v38  ;;  %1630 = vmatprep.mubr.msk.bf16.mxu1 %vm1758_vm0, %v1757_v0 }
  0xa7   : > { %1640 = vmatprep.subr.bf16.mxu1 %v1757_v0 }
  0xa9   : > { %1625 = vmatmul.mubr.msk.bf16.vlgmr.msra.gmra.mxu0 %vm304_vm2, %v1493_v40 }
  0xaa   : > { %1635 = vmatpush3.bf16.msra.mxu0 %v928_v41  ;;  %1636 = vmatprep.mubr.msk.bf16.mxu0 %vm1758_vm0, %v1757_v0 }
  0xab   : > { %1646 = vmatprep.subr.bf16.mxu0 %v1757_v0 }
  0xad   : > { %1631 = vmatmul.mubr.msk.bf16.vlgmr.msra.gmra.mxu1 %vm304_vm2, %v1495_v43 }
  0xae   : > { %1641 = vmatpush3.bf16.msra.mxu1 %v979_v44  ;;  %1642 = vmatprep.mubr.msk.bf16.mxu1 %vm1758_vm0, %v1757_v0 }
  0xaf   : > { %1652 = vmatprep.subr.bf16.mxu1 %v1757_v0 }
  0xb1   : > { %1637 = vmatmul.mubr.msk.bf16.vlgmr.msra.gmra.mxu0 %vm304_vm2, %v1497_v46 }
  0xb2   : > { %1647 = vmatpush3.bf16.msra.mxu0 %v1030_v47  ;;  %1648 = vmatprep.mubr.msk.bf16.mxu0 %vm1758_vm0, %v1757_v0 }
  0xb3   : > { %1658 = vmatprep.subr.mxu0 %v1757_v0 }
  0xb5   : > { %1643 = vmatmul.mubr.msk.bf16.vlgmr.msra.gmra.mxu1 %vm304_vm2, %v1499_v49 }
  0xb6   : > { %1653 = vmatpush3.bf16.msra.mxu1 %v1081_v50  ;;  %1654 = vmatprep.mubr.msk.bf16.mxu1 %vm1758_vm0, %v1757_v0 }
  0xb7   : > { %1679 = vmatprep.subr.mxu1 %v1757_v0 }
  0xb9   : > { %1649 = vmatmul.mubr.msk.bf16.vlgmr.msra.gmra.mxu0 %vm304_vm2, %v1501_v51 }
  0xba   : > { %1676 = vmatprep.mubr.msk.f32.mxu0 %vm1758_vm0, %v1757_v0  ;;  %1659 = vmatpush3.msra.mxu0 %v1135_v62 }
  0xbb   : > { %1660 = vmatprep.subr.mxu0 %v1757_v0 }
  0xbc   : > { %1661 = vmatpush3.msra.mxu0 %v1134_v63 }
  0xbd   : > { %1655 = vmatmul.mubr.msk.bf16.vlgmr.msra.gmra.mxu1 %vm304_vm2, %v1503_v52  ;;  %1662 = vmatprep.subr.mxu0 %v1757_v0 }
  0xbe   : > { %1697 = vmatprep.mubr.msk.f32.mxu1 %vm1758_vm0, %v1757_v0  ;;  %1680 = vmatpush3.msra.mxu1 %v1135_v62 }
  0xbf   : > { %1681 = vmatprep.subr.mxu1 %v1757_v0  ;;  %1663 = vmatpush3.msra.mxu0 %v1133_v1 }
  0xc0   : > { %1682 = vmatpush3.msra.mxu1 %v1134_v63  ;;  %1664 = vmatprep.subr.mxu0 %v1757_v0 }
  0xc1   : > { %1683 = vmatprep.subr.mxu1 %v1757_v0  ;;  %1665 = vmatpush3.msra.mxu0 %v1132_v2 }
  0xc2   : > { %1684 = vmatpush3.msra.mxu1 %v1133_v1  ;;  %1666 = vmatprep.subr.mxu0 %v1757_v0 }
  0xc3   : > { %1685 = vmatprep.subr.mxu1 %v1757_v0  ;;  %1667 = vmatpush3.msra.mxu0 %v1131_v3 }
  0xc4   : > { %1686 = vmatpush3.msra.mxu1 %v1132_v2  ;;  %1668 = vmatprep.subr.mxu0 %v1757_v0 }
  0xc5   : > { %1687 = vmatprep.subr.mxu1 %v1757_v0  ;;  %1669 = vmatpush3.msra.mxu0 %v1130_v4 }
  0xc6   : > { %1688 = vmatpush3.msra.mxu1 %v1131_v3  ;;  %1670 = vmatprep.subr.mxu0 %v1757_v0 }
  0xc7   : > { %1689 = vmatprep.subr.mxu1 %v1757_v0  ;;  %1671 = vmatpush3.msra.mxu0 %v1129_v5 }
  0xc8   : > { %1690 = vmatpush3.msra.mxu1 %v1130_v4  ;;  %1672 = vmatprep.subr.mxu0 %v1757_v0 }
  0xc9   : > { %1691 = vmatprep.subr.mxu1 %v1757_v0  ;;  %1673 = vmatpush3.msra.mxu0 %v1128_v6 }
  0xca   : > { %1692 = vmatpush3.msra.mxu1 %v1129_v5  ;;  %1674 = vmatprep.subr.mxu0 %v1757_v0 }
  0xcb   : > { %1693 = vmatprep.subr.mxu1 %v1757_v0  ;;  %1675 = vmatpush3.msra.mxu0 %v1127_v7 }
  0xcc   : > { %1694 = vmatpush3.msra.mxu1 %v1128_v6 }
  0xcd   : > { %1695 = vmatprep.subr.mxu1 %v1757_v0 }
  0xce   : > { %1696 = vmatpush3.msra.mxu1 %v1127_v7 }
  0xd4   : > { %v346_v53 = vpop.f32.mrf.mxu0  ;;  %v392_v55 = vpop.f32.mrf.mxu1 }
  0xd5   : > { %v1950_v56 = vadd.f32 %v392_v55, %v346_v53 }
  0xd6   : > { %v1566_v54 = vpop.f32.mrf.mxu0  ;;  %v1572_v58 = vpop.f32.mrf.mxu1 }
  0xd8   : > { %v349_v57 = vpop.f32.mrf.mxu0  ;;  %v395_v60 = vpop.f32.mrf.mxu1 }
  0xda   : > { %v1567_v59 = vpop.f32.mrf.mxu0  ;;  %v1573_v61 = vpop.f32.mrf.mxu1 }
 0x149   : > { %v445_v8 = vpop.f32.mrf.mxu0 }
 0x14a   : > { %v451_v33 = vadd.f32 %v445_v8, %v1950_v56 }
 0x14b   : > { %v1578_v9 = vpop.f32.mrf.mxu0 }
 0x14d   : > { %v448_v10 = vpop.f32.mrf.mxu0  ;;  %v499_v11 = vpop.f32.mrf.mxu1 }
 0x14e   : > { %v505_v36 = vadd.f32 %v499_v11, %v451_v33 }
 0x14f   : > { %v1579_v12 = vpop.f32.mrf.mxu0  ;;  %v1584_v13 = vpop.f32.mrf.mxu1 }
 0x151   : > { %v502_v14 = vpop.f32.mrf.mxu1  ;;  %v550_v15 = vpop.f32.mrf.mxu0 }
 0x152   : > { %v556_v39 = vadd.f32 %v550_v15, %v505_v36 }
 0x153   : > { %v1585_v16 = vpop.f32.mrf.mxu1  ;;  %v1590_v17 = vpop.f32.mrf.mxu0 }
 0x155   : > { %v553_v18 = vpop.f32.mrf.mxu0  ;;  %v601_v19 = vpop.f32.mrf.mxu1 }
 0x156   : > { %v607_v42 = vadd.f32 %v601_v19, %v556_v39 }
 0x157   : > { %v1591_v20 = vpop.f32.mrf.mxu0  ;;  %v1596_v21 = vpop.f32.mrf.mxu1 }
 0x159   : > { %v604_v22 = vpop.f32.mrf.mxu1  ;;  %v655_v23 = vpop.f32.mrf.mxu0 }
 0x15a   : > { %v661_v45 = vadd.f32 %v655_v23, %v607_v42 }
 0x15b   : > { %v1597_v24 = vpop.f32.mrf.mxu1  ;;  %v1602_v0 = vpop.f32.mrf.mxu0 }
 0x15d   : > { %v658_v25 = vpop.f32.mrf.mxu0  ;;  %v709_v26 = vpop.f32.mrf.mxu1 }
 0x15e   : > { %v715_v48 = vadd.f32 %v709_v26, %v661_v45 }
 0x15f   : > { %v1603_v27 = vpop.f32.mrf.mxu0  ;;  %v1608_v28 = vpop.f32.mrf.mxu1 }
 0x161   : > { %v712_v29 = vpop.f32.mrf.mxu1  ;;  %v760_v30 = vpop.f32.mrf.mxu0 }
 0x162   : > { %v766_v51 = vadd.f32 %v760_v30, %v715_v48 }
 0x163   : > { %v1609_v31 = vpop.f32.mrf.mxu1  ;;  %v1614_v32 = vpop.f32.mrf.mxu0 }
 0x165   : > { %v763_v34 = vpop.f32.mrf.mxu0  ;;  %v811_v35 = vpop.f32.mrf.mxu1 }
 0x166   : > { %v817_v54 = vadd.f32 %v811_v35, %v766_v51 }
 0x167   : > { %v1615_v37 = vpop.f32.mrf.mxu0  ;;  %v1620_v38 = vpop.f32.mrf.mxu1 }
 0x169   : > { %v814_v40 = vpop.f32.mrf.mxu1  ;;  %v862_v41 = vpop.f32.mrf.mxu0 }
 0x16a   : > { %v868_v57 = vadd.f32 %v862_v41, %v817_v54 }
 0x16b   : > { %v1621_v43 = vpop.f32.mrf.mxu1  ;;  %v1626_v44 = vpop.f32.mrf.mxu0 }
 0x16d   : > { %v865_v46 = vpop.f32.mrf.mxu0  ;;  %v913_v47 = vpop.f32.mrf.mxu1 }
 0x16e   : > { %v919_v60 = vadd.f32 %v913_v47, %v868_v57 }
 0x16f   : > { %v1627_v49 = vpop.f32.mrf.mxu0  ;;  %v1632_v50 = vpop.f32.mrf.mxu1 }
 0x171   : > { %v916_v52 = vpop.f32.mrf.mxu1  ;;  %v964_v53 = vpop.f32.mrf.mxu0 }
 0x172   : > { %v970_v63 = vadd.f32 %v964_v53, %v919_v60 }
 0x173   : > { %v1633_v55 = vpop.f32.mrf.mxu1  ;;  %v1638_v56 = vpop.f32.mrf.mxu0 }
 0x175   : > { %v967_v58 = vpop.f32.mrf.mxu0  ;;  %v1015_v59 = vpop.f32.mrf.mxu1 }
 0x176   : > { %v1021_v3 = vadd.f32 %v1015_v59, %v970_v63 }
 0x177   : > { %v1639_v61 = vpop.f32.mrf.mxu0  ;;  %v1644_v62 = vpop.f32.mrf.mxu1 }
 0x179   : > { %v1018_v1 = vpop.f32.mrf.mxu1  ;;  %v1066_v2 = vpop.f32.mrf.mxu0 }
 0x17a   : > { %v1072_v6 = vadd.f32 %v1066_v2, %v1021_v3 }
 0x17b   : > { %v1645_v4 = vpop.f32.mrf.mxu1  ;;  %v1650_v5 = vpop.f32.mrf.mxu0 }
 0x17d   : > { %v1117_v7 = vpop.f32.mrf.mxu1  ;;  %v1069_v8 = vpop.f32.mrf.mxu0 }
 0x17e   : > { %v1123_v9 = vadd.f32 %v1117_v7, %v1072_v6 }
 0x17f   : > { %v1656_v10 = vpop.f32.mrf.mxu1  ;;  %v1651_v11 = vpop.f32.mrf.mxu0 }
 0x180   : > { %v1124_v12 = vpack.c.bf16 %v1123_v9, %v1123_v9  ;;  %v1212_v13 = vmul.f32 %v1123_v9, %v1123_v9  ;;  %1677 = vmatmul.mubr.msk.f32.vlgmr.msra.gmra.mxu0 %vm1136_vm3, %v1123_v9 }
 0x181   : > { %v1120_v14 = vpop.f32.mrf.mxu1 }
 0x182   : > { %1126 = vst.msk [vmem:[%s282_s15] sm:$0xf] %vm1125_vm4, %v1124_v12  ;;  %1698 = vmatmul.mubr.msk.f32.vlgmr.msra.gmra.mxu1 %vm1136_vm3, %v1212_v13 }
 0x183   : > { %v1657_v15 = vpop.f32.mrf.mxu1 }
 0x240   : > { %v1206_v16 = vpop.f32.mrf.mxu0 }
 0x241   : > { %1211 = vst.msk [vmem:[%s289_s23] sm:$0xff] %vm1210_vm5, %v1206_v16 }
 0x242   : > { %v1678_v17 = vpop.f32.mrf.mxu0  ;;  %v1282_v18 = vpop.f32.mrf.mxu1 }
 0x243   : > { %1286 = vst.msk [vmem:[%s296_s26] sm:$0xff] %vm1210_vm5, %v1282_v18 }
 0x244   : > { %v1699_v19 = vpop.f32.mrf.mxu1 }
 0x245 PF: > { %s16_s20 = sadd.s32 1, %s1755_s20   ;;  %s2022_s18 = smov %s1751_s19 }
 0x246   : > { %p13_p5 = scmp.ge.s32.totalorder %s16_s20, 4   ;;  %s2023_s19 = smov %s2025_s21 }
 0x248   :  { %15 = sbr.rel (!%p13_p5) target bundleno = 2 (0x2), region = 107 }

</bundles_post_ra>
